<compile_context>
chip_gen: v7x
topology: tpu7x:2x2x1
jax: 0.10.0
libtpu: 0.0.40
codegen_flags: <defaults>
</compile_context>

<pallas_src>
import jax
import jax.numpy as jnp
from jax.experimental import pallas as pl
from jax.experimental.pallas import tpu as pltpu

GAMMA = 1.5
OUT_TILE = (8, 128)          # lane-dense per-split partial-sum output block


def _cdiv(a, b):
    return -(-a // b)


def _round_up(a, b):
    return _cdiv(a, b) * b


def _tpu_params():
    """(num_splits, target_elems, vmem_limit_bytes) tuned per TPU generation."""
    kind = ""
    try:
        kind = jax.devices()[0].device_kind.lower()
    except Exception:
        pass
    is_v7 = "v7" in kind
    if is_v7:
        # 64 MiB VMEM per TensorCore, 2 TensorCores per chip.
        return 2, 512 * 1024, 48 * 1024 * 1024
    # v5e / v6e: single TensorCore, 128 MiB physical VMEM.
    return 1, 1024 * 1024, 64 * 1024 * 1024


def _make_focal_kernel(gamma, tiles_per_split):
    gamma = float(gamma)

    def kernel(logits_ref, targets_ref, alpha_t_ref, out_ref, acc_ref):
        step = pl.program_id(1)

        @pl.when(step == 0)
        def _():
            acc_ref[...] = jnp.zeros_like(acc_ref)

        logits = logits_ref[...].astype(jnp.float32)          # (tile_n, C) f32
        tn, nc = logits.shape

        # Numerically stable logsumexp along the class (lane) axis.
        m = jnp.max(logits, axis=-1, keepdims=True)            # (tile_n, 1)
        shifted = logits - m
        lse = jnp.log(jnp.sum(jnp.exp(shifted), axis=-1, keepdims=True))

        # Gather the shifted logit at the target class with a select (no f32
        # one-hot, no 0 * -inf). Padded rows carry target == -1 -> mask all
        # False -> s_t = 0; their alpha_t is 0, so they contribute exactly 0.
        tgt = targets_ref[...]                                  # (tile_n, 1) i32
        class_ids = jax.lax.broadcasted_iota(jnp.int32, (tn, nc), 1)
        mask = class_ids == tgt                                 # (tile_n, C) bool
        s_t = jnp.sum(jnp.where(mask, shifted, 0.0), axis=-1, keepdims=True)

        log_pt = s_t - lse                                      # (tile_n, 1)
        pt = jnp.exp(log_pt)
        x = jnp.maximum(1.0 - pt, 0.0)                          # clamp rounding
        if gamma == 1.5:
            focal_weight = x * jnp.sqrt(x)        # (1-pt)**1.5 without EUP pow
        elif gamma == 2.0:
            focal_weight = x * x
        elif gamma == 1.0:
            focal_weight = x
        else:
            focal_weight = jnp.power(x, jnp.float32(gamma))

        focal_loss = alpha_t_ref[...] * focal_weight * (-log_pt)   # (tile_n, 1)
        acc_ref[...] += focal_loss

        # Sublane reduce + lane-dense store once per split, not per step.
        @pl.when(step == tiles_per_split - 1)
        def _():
            total = jnp.sum(acc_ref[...], keepdims=True)        # (1, 1)
            out_ref[...] = jnp.broadcast_to(total, OUT_TILE)

    return kernel


def frequency_weighted_focal_loss(logits, targets, alpha, gamma=GAMMA):
    """logits: (..., C) float (any float dtype); targets: (...,) int; alpha: (C,)."""
    c = logits.shape[-1]
    logits2d = logits.reshape(-1, c)          # keep native dtype (bf16 -> half HBM)
    n = logits2d.shape[0]
    targets_flat = targets.reshape(-1).astype(jnp.int32)
    targets2d = targets_flat.reshape(-1, 1)
    alpha = jnp.asarray(alpha, jnp.float32)
    # Wrapper-side alpha gather: one (N,1) f32 side input instead of a
    # per-tile one-hot * alpha multiply + lane reduction in the kernel.
    alpha_t2d = alpha[targets_flat].reshape(-1, 1)

    num_splits, target_elems, vmem_limit = _tpu_params()

    # --- tile sizing ---------------------------------------------------------
    # ~0.5-1M logits elements per tile (2-4 MiB per DMA buffer): large enough
    # to amortize the ~0.35us/step grid overhead, small enough that
    # double-buffered inputs + the ~3 live (tile_n, C) f32 temporaries stay
    # inside the per-generation scoped-VMEM budget.
    tile_n = max(8, min(4096, target_elems // max(c, 1)))
    tile_n = max(8, (tile_n // 8) * 8)             # sublane multiple of 8
    tile_n = min(tile_n, _round_up(n, 8))          # don't tile past the data

    n_tiles = _cdiv(n, tile_n)
    tiles_per_split = _cdiv(n_tiles, num_splits)
    n_pad = num_splits * tiles_per_split * tile_n

    if n_pad > n:
        pad = n_pad - n
        logits2d = jnp.pad(logits2d, ((0, pad), (0, 0)))
        # target = -1 -> mask all-False; alpha_t = 0 -> zero contribution.
        targets2d = jnp.pad(targets2d, ((0, pad), (0, 0)), constant_values=-1)
        alpha_t2d = jnp.pad(alpha_t2d, ((0, pad), (0, 0)))

    itemsize = logits2d.dtype.itemsize
    cost = pl.CostEstimate(
        flops=int(6 * n_pad * c),
        transcendentals=int(n_pad * c),
        bytes_accessed=int(n_pad * c * itemsize + 2 * n_pad * 4
                           + num_splits * OUT_TILE[0] * OUT_TILE[1] * 4),
    )

    out = pl.pallas_call(
        _make_focal_kernel(gamma, tiles_per_split),
        out_shape=jax.ShapeDtypeStruct((num_splits * OUT_TILE[0], OUT_TILE[1]),
                                       jnp.float32),
        grid_spec=pltpu.PrefetchScalarGridSpec(
            num_scalar_prefetch=0,
            grid=(num_splits, tiles_per_split),
            in_specs=[
                pl.BlockSpec((tile_n, c),
                             lambda s, i: (s * tiles_per_split + i, 0)),
                pl.BlockSpec((tile_n, 1),
                             lambda s, i: (s * tiles_per_split + i, 0)),
                pl.BlockSpec((tile_n, 1),
                             lambda s, i: (s * tiles_per_split + i, 0)),
            ],
            out_specs=pl.BlockSpec(OUT_TILE, lambda s, i: (s, 0)),
            scratch_shapes=[pltpu.VMEM((tile_n, 1), jnp.float32)],
        ),
        compiler_params=pltpu.CompilerParams(
            dimension_semantics=("parallel", "arbitrary"),
            vmem_limit_bytes=vmem_limit,
        ),
        cost_estimate=cost,
    )(logits2d, targets2d, alpha_t2d)

    partials = out.reshape(num_splits, OUT_TILE[0], OUT_TILE[1])[:, 0, 0]
    return jnp.sum(partials) / jnp.float32(n)


def _reference(logits, targets, alpha, gamma=GAMMA):
    """Pure-JAX reference matching the PyTorch forward."""
    log_probs = jax.nn.log_softmax(logits.astype(jnp.float32), axis=-1)
    log_pt = jnp.take_along_axis(
        log_probs, targets[..., None].astype(jnp.int32), axis=-1
    )[..., 0]
    pt = jnp.exp(log_pt)
    focal_weight = (1.0 - pt) ** gamma
    alpha_factor = alpha[targets]
    focal_loss = alpha_factor * focal_weight * (-log_pt)
    return jnp.mean(focal_loss)


if __name__ == "__main__":
    key = jax.random.PRNGKey(0)
    k_logits, k_targets, k_alpha = jax.random.split(key, 3)

    batch, seq, num_classes = 2, 8, 32
    logits = jax.random.normal(k_logits, (batch, seq, num_classes), jnp.float32)
    targets = jax.random.randint(k_targets, (batch, seq), 0, num_classes, jnp.int32)
    # Deterministic synthetic frequency weights (what __init__ would receive).
    alpha = jax.random.uniform(
        k_alpha, (num_classes,), jnp.float32, minval=0.1, maxval=1.0
    )

    loss = frequency_weighted_focal_loss(logits, targets, alpha)
    loss = jax.block_until_ready(loss)

    ref = jax.block_until_ready(_reference(logits, targets, alpha))
    assert jnp.allclose(loss, ref, rtol=1e-5, atol=1e-5), (loss, ref)

    print("KERNEL_OK")
</pallas_src>

<mosaic_0001>
module attributes {stable_mosaic.version = 11 : i64} {
  func.func @kernel(%arg0: i32, %arg1: i32, %arg2: memref<16x32xf32, #tpu.memory_space<vmem>>, %arg3: memref<16x1xi32, #tpu.memory_space<vmem>>, %arg4: memref<16x1xf32, #tpu.memory_space<vmem>>, %arg5: memref<8x128xf32, #tpu.memory_space<vmem>>, %arg6: memref<16x1xf32, #tpu.memory_space<vmem>>) attributes {dimension_semantics = [#tpu.dimension_semantics<parallel>, #tpu.dimension_semantics<arbitrary>], iteration_bounds = array<i64: 1, 1>, scalar_prefetch = 0 : i64, scratch_operands = 1 : i64, tpu.core_type = #tpu.core_type<tc>, window_params = [{transform_indices = @transform_0, window_bounds = array<i64: 16, 32>}, {transform_indices = @transform_1, window_bounds = array<i64: 16, 1>}, {transform_indices = @transform_2, window_bounds = array<i64: 16, 1>}, {transform_indices = @transform_3, window_bounds = array<i64: 8, 128>}]} {
    %c0_i32 = arith.constant 0 : i32
    %0 = arith.cmpi eq, %arg1, %c0_i32 : i32
    %1 = arith.extui %0 : i1 to i32
    %c0_i32_0 = arith.constant 0 : i32
    %2 = arith.cmpi ne, %1, %c0_i32_0 : i32
    scf.if %2 {
      %cst_18 = arith.constant 0.000000e+00 : f32
      %39 = vector.broadcast %cst_18 : f32 to vector<16x1xf32>
      %c0_19 = arith.constant 0 : index
      %c0_20 = arith.constant 0 : index
      %40 = vector.load %arg6[%c0_19, %c0_20] : memref<16x1xf32, #tpu.memory_space<vmem>>, vector<16x1xf32>
      tpu.vector_store %arg6[%c0_19, %c0_20], %39 {strides = array<i32>} : memref<16x1xf32, #tpu.memory_space<vmem>>, vector<16x1xf32>,
    } else {
    }
    %c0 = arith.constant 0 : index
    %c0_1 = arith.constant 0 : index
    %3 = vector.load %arg2[%c0, %c0_1] : memref<16x32xf32, #tpu.memory_space<vmem>>, vector<16x32xf32>
    %cst = arith.constant dense<0xFF800000> : vector<16xf32>
    %4 = vector.multi_reduction <maximumf>, %3, %cst [1] : vector<16x32xf32> to vector<16xf32>
    %5 = vector.shape_cast %4 : vector<16xf32> to vector<16x1xf32>
    %6 = vector.broadcast %5 : vector<16x1xf32> to vector<16x32xf32>
    %7 = arith.subf %3, %6 : vector<16x32xf32>
    %8 = math.exp %7 : vector<16x32xf32>
    %cst_2 = arith.constant dense<0.000000e+00> : vector<16xf32>
    %9 = vector.multi_reduction <add>, %8, %cst_2 [1] : vector<16x32xf32> to vector<16xf32>
    %10 = vector.shape_cast %9 : vector<16xf32> to vector<16x1xf32>
    %11 = math.log %10 : vector<16x1xf32>
    %c0_3 = arith.constant 0 : index
    %c0_4 = arith.constant 0 : index
    %12 = vector.load %arg3[%c0_3, %c0_4] : memref<16x1xi32, #tpu.memory_space<vmem>>, vector<16x1xi32>
    %13 = tpu.iota {dimensions = array<i32: 1>} : vector<16x32xi32>
    %14 = vector.broadcast %12 : vector<16x1xi32> to vector<16x32xi32>
    %15 = arith.cmpi eq, %13, %14 : vector<16x32xi32>
    %cst_5 = arith.constant 0.000000e+00 : f32
    %16 = vector.broadcast %cst_5 : f32 to vector<16x32xf32>
    %17 = arith.select %15, %7, %16 : vector<16x32xi1>, vector<16x32xf32>
    %cst_6 = arith.constant dense<0.000000e+00> : vector<16xf32>
    %18 = vector.multi_reduction <add>, %17, %cst_6 [1] : vector<16x32xf32> to vector<16xf32>
    %19 = vector.shape_cast %18 : vector<16xf32> to vector<16x1xf32>
    %20 = arith.subf %19, %11 : vector<16x1xf32>
    %21 = math.exp %20 : vector<16x1xf32>
    %cst_7 = arith.constant 1.000000e+00 : f32
    %22 = vector.broadcast %cst_7 : f32 to vector<16x1xf32>
    %23 = arith.subf %22, %21 : vector<16x1xf32>
    %cst_8 = arith.constant 0.000000e+00 : f32
    %24 = vector.broadcast %cst_8 : f32 to vector<16x1xf32>
    %25 = arith.maximumf %23, %24 : vector<16x1xf32>
    %26 = math.sqrt %25 : vector<16x1xf32>
    %27 = arith.mulf %25, %26 : vector<16x1xf32>
    %c0_9 = arith.constant 0 : index
    %c0_10 = arith.constant 0 : index
    %28 = vector.load %arg4[%c0_9, %c0_10] : memref<16x1xf32, #tpu.memory_space<vmem>>, vector<16x1xf32>
    %29 = arith.mulf %28, %27 : vector<16x1xf32>
    %cst_11 = arith.constant 0.000000e+00 : f32
    %30 = vector.broadcast %cst_11 : f32 to vector<16x1xf32>
    %31 = arith.subf %30, %20 : vector<16x1xf32>
    %32 = arith.mulf %29, %31 : vector<16x1xf32>
    %c0_12 = arith.constant 0 : index
    %c0_13 = arith.constant 0 : index
    %33 = vector.load %arg6[%c0_12, %c0_13] : memref<16x1xf32, #tpu.memory_space<vmem>>, vector<16x1xf32>
    %34 = arith.addf %33, %32 : vector<16x1xf32>
    %c0_14 = arith.constant 0 : index
    %c0_15 = arith.constant 0 : index
    %35 = vector.load %arg6[%c0_14, %c0_15] : memref<16x1xf32, #tpu.memory_space<vmem>>, vector<16x1xf32>
    tpu.vector_store %arg6[%c0_14, %c0_15], %34 {strides = array<i32>} : memref<16x1xf32, #tpu.memory_space<vmem>>, vector<16x1xf32>,
    %c0_i32_16 = arith.constant 0 : i32
    %36 = arith.cmpi eq, %arg1, %c0_i32_16 : i32
    %37 = arith.extui %36 : i1 to i32
    %c0_i32_17 = arith.constant 0 : i32
    %38 = arith.cmpi ne, %37, %c0_i32_17 : i32
    scf.if %38 {
      %c0_18 = arith.constant 0 : index
      %c0_19 = arith.constant 0 : index
      %39 = vector.load %arg6[%c0_18, %c0_19] : memref<16x1xf32, #tpu.memory_space<vmem>>, vector<16x1xf32>
      %40 = vector.shape_cast %39 : vector<16x1xf32> to vector<1x16x1xf32>
      %cst_20 = arith.constant dense<0.000000e+00> : vector<1xf32>
      %41 = vector.multi_reduction <add>, %40, %cst_20 [1, 2] : vector<1x16x1xf32> to vector<1xf32>
      %42 = vector.shape_cast %41 : vector<1xf32> to vector<1x1x1xf32>
      %43 = vector.extract %42[0, 0, 0] : f32 from vector<1x1x1xf32>
      %44 = vector.broadcast %43 : f32 to vector<1x1xf32>
      %45 = vector.shape_cast %44 : vector<1x1xf32> to vector<1x1xf32>
      %46 = vector.broadcast %45 : vector<1x1xf32> to vector<8x128xf32>
      %c0_21 = arith.constant 0 : index
      %c0_22 = arith.constant 0 : index
      %47 = vector.load %arg5[%c0_21, %c0_22] : memref<8x128xf32, #tpu.memory_space<vmem>>, vector<8x128xf32>
      tpu.vector_store %arg5[%c0_21, %c0_22], %46 {strides = array<i32>} : memref<8x128xf32, #tpu.memory_space<vmem>>, vector<8x128xf32>,
    } else {
    }
    return
  }
  func.func @transform_0(%arg0: i32, %arg1: i32) -> (i32, i32) {
    %c1_i32 = arith.constant 1 : i32
    %0 = arith.muli %arg0, %c1_i32 : i32
    %1 = arith.addi %0, %arg1 : i32
    %c0_i32 = arith.constant 0 : i32
    %c0_i32_0 = arith.constant 0 : i32
    return %1, %c0_i32 : i32, i32
  }
  func.func @transform_1(%arg0: i32, %arg1: i32) -> (i32, i32) {
    %c1_i32 = arith.constant 1 : i32
    %0 = arith.muli %arg0, %c1_i32 : i32
    %1 = arith.addi %0, %arg1 : i32
    %c0_i32 = arith.constant 0 : i32
    %c0_i32_0 = arith.constant 0 : i32
    return %1, %c0_i32 : i32, i32
  }
  func.func @transform_2(%arg0: i32, %arg1: i32) -> (i32, i32) {
    %c1_i32 = arith.constant 1 : i32
    %0 = arith.muli %arg0, %c1_i32 : i32
    %1 = arith.addi %0, %arg1 : i32
    %c0_i32 = arith.constant 0 : i32
    %c0_i32_0 = arith.constant 0 : i32
    return %1, %c0_i32 : i32, i32
  }
  func.func @transform_3(%arg0: i32, %arg1: i32) -> (i32, i32) {
    %c0_i32 = arith.constant 0 : i32
    %c0_i32_0 = arith.constant 0 : i32
    return %arg0, %c0_i32 : i32, i32
  }
}

</mosaic_0001>

<bundles_post_ra>
// kernel: tpu_custom_call.1
= control target key start
LH: loop header
LB: loop body
LE: loop exit
PB: predicated region body
PF: predicated region fallthrough
CT: control target
= control target key end

     0   :  { %8 = vsyncpa [#allocation4], 0  ;;  %s428_s0 = inlined_call_operand.hbm [shape: f32[16,32], index: 0, kind: input, shape index: {}]   ;;  %s429_s1 = inlined_call_operand.hbm [shape: s32[16,1], index: 1, kind: input, shape index: {}]   ;;  %s430_s2 = inlined_call_operand.hbm [shape: f32[16,1], index: 2, kind: input, shape index: {}]   ;;  %s431_s3 = inlined_call_operand.hbm [shape: f32[8,128], index: 3, kind: output, shape index: {}]  }
   0x1   :  { %9 = vsyncpa [#allocation7], 0 }
   0x2   :  { %10 = vsyncpa [#allocation5], 0  ;;  %s324_s12 = smov [#allocation6]   ;;  %s325_s14 = smov [#allocation3]  }
   0x3   :  { %s36_s13 = sshll.u32 %s324_s12, 4  ;;  %s20_s15 = sshll.u32 %s325_s14, 4  ;;  %s37_s13 = int_to_ptr.vmem [resolvable:$true] %s36_s13  ;;  %s352_s15 = int_to_ptr.vmem [resolvable:$true] %s20_s15 }
   0x4   :  { %s230_s18 = scalar_lea.hbm %s429_s1, 256 }
   0x5   :  { %p231_p0 = scmp.ne.s32.totalorder %s429_s1, %s230_s18  ;;  %p234_p1 = scmp.lt.u32.totalorder %s230_s18, %s429_s1 }
   0x7   :  { %p236_p2 = pnand %p234_p1, %p231_p0 }
   0x9   :  { %239 = shalt.err (!%p236_p2)
}
   0xa   :  { %s240_s23 = scalar_lea.vmem %s37_s13, 256  ;;  %p245_p4 = scmp.lt.s32.totalorder %s37_s13, %s37_s13 }
   0xb   :  { %p241_p3 = scmp.ne.s32.totalorder %s37_s13, %s240_s23  ;;  %p246_p5 = scmp.lt.s32.totalorder %s240_s23, %s240_s23 }
   0xd   :  { %p247_p6 = por %p246_p5, %p245_p4 }
   0xf   :  { %p248_p7 = pnand %p247_p6, %p241_p3 }
  0x11   :  { %251 = shalt.err (!%p248_p7)
}
  0x12   :  { %s326_s24 = smov 128   ;;  %s327_s25 = smov 8  }
  0x13   :  { %42 = dma.hbm_to_vmem [thread:$0]  %s429_s1, 256, %s37_s13, [#allocation7], %s326_s24, %s326_s24, %s327_s25  }
  0x14   :  { %s252_s30 = scalar_lea.hbm %s428_s0, 256 }
  0x15   :  { %p253_p8 = scmp.ne.s32.totalorder %s428_s0, %s252_s30  ;;  %p256_p9 = scmp.lt.u32.totalorder %s252_s30, %s428_s0 }
  0x17   :  { %p258_p10 = pnand %p256_p9, %p253_p8 }
  0x19   :  { %261 = shalt.err (!%p258_p10)
}
  0x1a   :  { %s262_s8 = scalar_lea.vmem %s352_s15, 256  ;;  %p267_p12 = scmp.lt.s32.totalorder %s352_s15, %s352_s15 }
  0x1b   :  { %p263_p11 = scmp.ne.s32.totalorder %s352_s15, %s262_s8  ;;  %p268_p13 = scmp.lt.s32.totalorder %s262_s8, %s262_s8 }
  0x1d   :  { %p269_p0 = por %p268_p13, %p267_p12 }
  0x1f   :  { %p270_p1 = pnand %p269_p0, %p263_p11 }
  0x21   :  { %273 = shalt.err (!%p270_p1)
}
  0x22   :  { %26 = dma.hbm_to_vmem [thread:$0]  %s428_s0, 256, %s352_s15, [#allocation4], %s326_s24, %s326_s24, %s327_s25  }
  0x23   :  { %s328_s10 = smov [#allocation8]   ;;  %s274_s14 = scalar_lea.hbm %s430_s2, 256 }
  0x24   :  { %s52_s11 = sshll.u32 %s328_s10, 4  ;;  %p275_p2 = scmp.ne.s32.totalorder %s430_s2, %s274_s14  ;;  %s53_s11 = int_to_ptr.vmem [resolvable:$true] %s52_s11 }
  0x25   :  { %p278_p3 = scmp.lt.u32.totalorder %s274_s14, %s430_s2 }
  0x27   :  { %p280_p4 = pnand %p278_p3, %p275_p2 }
  0x29   :  { %283 = shalt.err (!%p280_p4)
}
  0x2a   :  { %s284_s20 = scalar_lea.vmem %s53_s11, 256  ;;  %p289_p6 = scmp.lt.s32.totalorder %s53_s11, %s53_s11 }
  0x2b   :  { %p285_p5 = scmp.ne.s32.totalorder %s53_s11, %s284_s20  ;;  %p290_p7 = scmp.lt.s32.totalorder %s284_s20, %s284_s20 }
  0x2d   :  { %p291_p8 = por %p290_p7, %p289_p6 }
  0x2f   :  { %p292_p9 = pnand %p291_p8, %p285_p5 }
  0x31   :  { %295 = shalt.err (!%p292_p9)
}
  0x32   :  { %58 = dma.hbm_to_vmem [thread:$0]  %s430_s2, 256, %s53_s11, [#allocation7], %s326_s24, %s326_s24, %s327_s25  }
  0x33   :  { %318 = dma.done.wait [#allocation4], 256  }
  0x34   :  { %319 = vsyncadd [#allocation4], 4294967040 }
  0x35   :  { %320 = dma.done.wait [#allocation7], 512  }
  0x36   :  { %321 = vsyncadd [#allocation7], 4294966784  ;;  %v329_v0 = vmov 0   ;;  %vm83_vm0 = vcmask 261120   ;;  %v81_v1 = vld [vmem:[#allocation3] sm:$0xff]  ;;  %v82_v2 = vld [vmem:[#allocation3 + $0x8] sm:$0xff]  ;;  %v108_v12 = vlaneseq }
  0x37   :  { %212 = vset.pattern.permute.xlu1 %v329_v0  ;;  %213 = vset.pattern.permute.xlu0 %v329_v0  ;;  %v106_v3 = vld [vmem:[#allocation6] sm:$0xff]  ;;  %v84_v4 = vsel %vm83_vm0, %v81_v1, -inf  ;;  %v107_v5 = vld [vmem:[#allocation6 + $0x8] sm:$0xff]  ;;  %v87_v6 = vsel %vm83_vm0, %v82_v2, -inf  ;;  %vm78_vm3 = vcmask 7168   ;;  %v330_v25 = vmov 0.0  }
  0x38   :  { %111 = vperm.xlu1 %212, %v106_v3   ;;  %85 = vmax.xlane.f32.xlu0 %v84_v4  ;;  %v109_v15 = vand.u32 127, %v108_v12  ;;  %79 = vst.msk [vmem:[#allocation2] sm:$0xff] %vm78_vm3, %v330_v25  ;;  %80 = vst.msk [vmem:[#allocation2 + $0x8] sm:$0xff] %vm78_vm3, %v330_v25  ;;  %v152_v48 = vld [vmem:[#allocation8] sm:$0xff]  ;;  %v153_v59 = vld [vmem:[#allocation8 + $0x8] sm:$0xff]  ;;  %s331_s2 = smov [#allocation9]  }
  0x39   :  { %s192_s21 = sshll.u32 %s331_s2, 4  ;;  %s193_s21 = int_to_ptr.vmem [resolvable:$true] %s192_s21 }
  0x3a   :  { %s296_s23 = scalar_lea.vmem %s193_s21, 128  ;;  %p301_p11 = scmp.lt.s32.totalorder %s193_s21, %s193_s21 }
  0x3b   :  { %p297_p10 = scmp.ne.s32.totalorder %s193_s21, %s296_s23  ;;  %p302_p12 = scmp.lt.s32.totalorder %s296_s23, %s296_s23 }
  0x3c   :  { %114 = vperm.xlu1 %212, %v107_v5   ;;  %88 = vmax.xlane.f32.xlu0 %v87_v6 }
  0x3d   :  { %p303_p13 = por %p302_p12, %p301_p11 }
  0x3f   :  { %v160_v56 = vld [vmem:[#allocation2] sm:$0xff]  ;;  %p304_p0 = pnand %p303_p13, %p297_p10 }
  0xb7   :  { %v112_v14 = vpop.permute.xlu1 %111 }
  0xb8   :  { %vm116_vm1 = vcmp.eq.s32.totalorder %v109_v15, %v112_v14 }
  0xbb   :  { %v115_v17 = vpop.permute.xlu1 %114 }
  0xbc   :  { %vm117_vm2 = vcmp.eq.s32.totalorder %v109_v15, %v115_v17 }
  0xc5   :  { %v86_v7 = vpop.xlane.xlu0 %85 }
  0xc6   :  { %v90_v8 = vsub.f32 %v81_v1, %v86_v7  ;;  %v161_v1 = vld [vmem:[#allocation2 + $0x8] sm:$0xff] }
  0xc8   :  { %v92_v9 = vmul.f32 1.442695, %v90_v8  ;;  %v118_v19 = vsel %vm116_vm1, %v90_v8, 0.0 }
  0xc9   :  { %v89_v10 = vpop.xlane.xlu0 %88  ;;  %v120_v21 = vsel %vm83_vm0, %v118_v19, 0.0 }
  0xca   :  { %214 = vpow2.f32 %v92_v9  ;;  %v91_v11 = vsub.f32 %v82_v2, %v89_v10 }
  0xcc   :  { %v94_v13 = vmul.f32 1.442695, %v91_v11  ;;  %v119_v23 = vsel %vm117_vm2, %v91_v11, 0.0 }
  0xcd   :  { %v123_v24 = vsel %vm83_vm0, %v119_v23, 0.0 }
  0xce   :  { %216 = vpow2.f32 %v94_v13 }
  0xd4   :  { %v215_v16 = vpop.eup %214 }
  0xd5   :  { %v96_v18 = vsel %vm83_vm0, %v215_v16, 0.0 }
  0xd6   :  { %97 = vadd.xlane.f32.xlu0 %v96_v18 }
  0xd8   :  { %v217_v20 = vpop.eup %216 }
  0xd9   :  { %v99_v22 = vsel %vm83_vm0, %v217_v20, 0.0 }
  0xda   :  { %121 = vadd.xlane.f32.xlu0 %v120_v21  ;;  %100 = vadd.xlane.f32.xlu1 %v99_v22 }
  0xde   :  { %124 = vadd.xlane.f32.xlu0 %v123_v24 }
 0x163   :  { %v98_v26 = vpop.xlane.xlu0 %97 }
 0x164   :  { %218 = vlog2.f32 %v98_v26 }
 0x167   :  { %v101_v27 = vpop.xlane.xlu1 %100  ;;  %v122_v29 = vpop.xlane.xlu0 %121 }
 0x168   :  { %220 = vlog2.f32 %v101_v27 }
 0x16b   :  { %v125_v35 = vpop.xlane.xlu0 %124 }
 0x16e   :  { %v219_v28 = vpop.eup %218 }
 0x16f   :  { %v103_v30 = vmul.f32 0.6931472, %v219_v28 }
 0x171   :  { %v126_v31 = vsub.f32 %v122_v29, %v103_v30 }
 0x172   :  { %v221_v32 = vpop.eup %220 }
 0x173   :  { %v128_v33 = vmul.f32 1.442695, %v126_v31  ;;  %v105_v34 = vmul.f32 0.6931472, %v221_v32  ;;  %v156_v54 = vsub.f32 0.0, %v126_v31 }
 0x175   :  { %222 = vpow2.f32 %v128_v33  ;;  %v127_v36 = vsub.f32 %v125_v35, %v105_v34 }
 0x177   :  { %v130_v37 = vmul.f32 1.442695, %v127_v36  ;;  %v157_v0 = vsub.f32 0.0, %v127_v36 }
 0x179   :  { %224 = vpow2.f32 %v130_v37 }
 0x17f   :  { %v223_v38 = vpop.eup %222 }
 0x180   :  { %v132_v39 = vsub.f32 1.0, %v223_v38 }
 0x182   :  { %v134_v40 = vmax.f32 %v132_v39, 0.0 }
 0x183   :  { %v225_v41 = vpop.eup %224 }
 0x184   :  { %226 = vrsqrt.f32 %v134_v40  ;;  %v133_v42 = vsub.f32 1.0, %v225_v41  ;;  %vm138_vm4 = vcmp.eq.f32.partialorder %v134_v40, inf  ;;  %v141_v46 = vand.u32 2147483648, %v134_v40 }
 0x185   :  { %vm140_vm5 = vcmp.eq.f32.partialorder %v134_v40, 0.0 }
 0x186   :  { %v135_v43 = vmax.f32 %v133_v42, 0.0 }
 0x188   :  { %228 = vrsqrt.f32 %v135_v43  ;;  %vm145_vm6 = vcmp.eq.f32.partialorder %v135_v43, inf  ;;  %v148_v55 = vand.u32 2147483648, %v135_v43  ;;  %vm147_vm7 = vcmp.eq.f32.partialorder %v135_v43, 0.0 }
 0x18e   :  { %v227_v44 = vpop.eup %226 }
 0x18f   :  { %v137_v45 = vmul.f32 %v227_v44, %v134_v40 }
 0x191   :  { %v139_v47 = vsel %vm138_vm4, %v134_v40, %v137_v45 }
 0x192   :  { %v142_v49 = vsel %vm140_vm5, %v141_v46, %v139_v47  ;;  %v229_v50 = vpop.eup %228 }
 0x193   :  { %v150_v51 = vmul.f32 %v142_v49, %v134_v40  ;;  %v144_v52 = vmul.f32 %v229_v50, %v135_v43 }
 0x195   :  { %v154_v53 = vmul.f32 %v152_v48, %v150_v51  ;;  %v146_v57 = vsel %vm145_vm6, %v135_v43, %v144_v52 }
 0x196   :  { %v149_v60 = vsel %vm147_vm7, %v148_v55, %v146_v57 }
 0x197   :  { %v158_v58 = vmul.f32 %v156_v54, %v154_v53  ;;  %v151_v61 = vmul.f32 %v149_v60, %v135_v43 }
 0x199   :  { %v162_v62 = vadd.f32 %v160_v56, %v158_v58  ;;  %v155_v63 = vmul.f32 %v153_v59, %v151_v61 }
 0x19b   :  { %165 = vst.msk [vmem:[#allocation2] sm:$0xff] %vm78_vm3, %v162_v62  ;;  %v159_v2 = vmul.f32 %v157_v0, %v155_v63 }
 0x19d   :  { %v163_v3 = vadd.f32 %v161_v1, %v159_v2 }
 0x19f   :  { %166 = vst.msk [vmem:[#allocation2 + $0x8] sm:$0xff] %vm78_vm3, %v163_v3 }
 0x1a2   :  { %v170_v4 = vld [vmem:[#allocation2] sm:$0xff] }
 0x1a3   :  { %v172_v6 = vsel %vm78_vm3, %v170_v4, 0.0 }
 0x1a6   :  { %v171_v5 = vld [vmem:[#allocation2 + $0x8] sm:$0xff] }
 0x1a7   :  { %v173_v7 = vsel %vm78_vm3, %v171_v5, 0.0 }
 0x1a8   :  { %v174_v8 = vadd.f32 %v173_v7, %v172_v6 }
 0x1aa   :  { %175 = vadd.xlane.f32.xlu0 %v174_v8 }
 0x237   :  { %v176_v9 = vpop.xlane.xlu0 %175 }
 0x238   :  { %v177_v10 = vrot.slane %v176_v9, 4 }
 0x23a   :  { %v178_v11 = vadd.f32 %v177_v10, %v176_v9 }
 0x23c   :  { %v179_v12 = vrot.slane %v178_v11, 2 }
 0x23e   :  { %v180_v13 = vadd.f32 %v179_v12, %v178_v11 }
 0x240   :  { %v181_v14 = vrot.slane %v180_v13, 1 }
 0x242   :  { %v182_v15 = vadd.f32 %v181_v14, %v180_v13 }
 0x244   :  { %202 = vpush %v182_v15 }
 0x275   :  { %s203_s22 = spop %202 }
 0x276   :  { %v184_v16 = vstv %s203_s22 }
 0x277   :  { %185 = vst [vmem:[#allocation9] sm:$0xff] %v184_v16 }
 0x278   :  { %307 = shalt.err (!%p304_p0)
}
 0x279   :  { %s308_s26 = scalar_lea.hbm %s431_s3, 128 }
 0x27a   :  { %p309_p1 = scmp.ne.s32.totalorder %s431_s3, %s308_s26  ;;  %p312_p2 = scmp.lt.u32.totalorder %s308_s26, %s431_s3 }
 0x27c   :  { %p314_p3 = pnand %p312_p2, %p309_p1 }
 0x27e   :  { %317 = shalt.err (!%p314_p3)
}
 0x27f   :  { %195 = dma.vmem_to_hbm [thread:$0]  %s193_s21, 128, %s431_s3, [#allocation5]  }
 0x280   :  { %322 = dma.done.wait [#allocation5], 128  }
 0x281   :  { %323 = vsyncadd [#allocation5], 4294967168 }
 0x282   :  { %199 = vsyncpa [#allocation4], 1 }
 0x283   :  { %200 = vsyncpa [#allocation7], 1 }
 0x284   :  { %201 = vsyncpa [#allocation5], 1 }

</bundles_post_ra>
